<compile_context>
chip_gen: v7x
topology: tpu7x:2x2x1
jax: 0.10.0
libtpu: 0.0.40
codegen_flags: <defaults>
</compile_context>

<pallas_src>
import jax
import jax.numpy as jnp
from jax.experimental import pallas as pl
from jax.experimental.pallas import tpu as pltpu


def relu_conv1x1_kernel(x_ref, w_ref, o_ref):
    # x_ref: (1, Cin, HW), w_ref: (Cout, Cin), o_ref: (1, Cout, HW)
    x = jnp.maximum(x_ref[0], 0.0)  # fused ReLU (VPU), shape (Cin, HW)
    o_ref[0] = jnp.dot(
        w_ref[...], x, preferred_element_type=jnp.float32  # MXU matmul
    ).astype(o_ref.dtype)


def relu_conv2d_1x1(x_nchw: jax.Array, weight: jax.Array) -> jax.Array:
    """ReLU followed by 1x1 conv (no bias), matching PyTorch semantics.

    x_nchw: (N, Cin, H, W) float32
    weight: (Cout, Cin, 1, 1) float32  (PyTorch Conv2d weight layout)
    returns: (N, Cout, H, W) float32
    """
    N, Cin, H, W = x_nchw.shape
    Cout = weight.shape[0]
    HW = H * W

    # Free reshapes (no transposes, no copies of the activation):
    x_mat = x_nchw.reshape(N, Cin, HW)       # (N, Cin, HW)
    w_mat = weight.reshape(Cout, Cin)        # (Cout, Cin)

    itemsize = jnp.dtype(x_nchw.dtype).itemsize
    cost = pl.CostEstimate(
        flops=2 * N * Cout * Cin * HW,
        transcendentals=0,
        bytes_accessed=(x_mat.size + w_mat.size + N * Cout * HW) * itemsize,
    )

    out = pl.pallas_call(
        relu_conv1x1_kernel,
        out_shape=jax.ShapeDtypeStruct((N, Cout, HW), x_nchw.dtype),
        grid=(N,),
        in_specs=[
            # One batch element per grid step; (Cin, HW) block equals full dims.
            pl.BlockSpec((1, Cin, HW), lambda n: (n, 0, 0)),
            # Weight is small (Cout*Cin*4 bytes); same block every step.
            pl.BlockSpec((Cout, Cin), lambda n: (0, 0)),
        ],
        out_specs=pl.BlockSpec((1, Cout, HW), lambda n: (n, 0, 0)),
        compiler_params=pltpu.CompilerParams(
            dimension_semantics=("parallel",),  # batch axis shards across TCs (v7x)
        ),
        cost_estimate=cost,
    )(x_mat, w_mat)

    # Free reshape back to NCHW: (N, Cout, HW) -> (N, Cout, H, W)
    return out.reshape(N, Cout, H, W)


if __name__ == "__main__":
    key = jax.random.PRNGKey(0)
    kx, kw = jax.random.split(key)

    # Shapes from the module: input (1, 120, 28, 28), conv 120 -> 120, 1x1, no bias.
    N, C, H, W = 1, 120, 28, 28
    x = jax.random.normal(kx, (N, C, H, W), dtype=jnp.float32)
    # Deterministic weight init (kaiming-uniform-like scale for a 1x1 conv).
    bound = 1.0 / (C ** 0.5)
    weight = jax.random.uniform(
        kw, (C, C, 1, 1), dtype=jnp.float32, minval=-bound, maxval=bound
    )

    out = relu_conv2d_1x1(x, weight)
    out = jax.block_until_ready(out)

    # Sanity check against a plain-JAX reference of the same math.
    ref = jnp.einsum(
        "nchw,oc->nohw", jnp.maximum(x, 0.0), weight.reshape(C, C)
    )
    assert out.shape == (N, C, H, W)
    assert jnp.allclose(out, ref, atol=1e-4, rtol=1e-4)

    print("KERNEL_OK")
</pallas_src>

<mosaic_0001>
module attributes {stable_mosaic.version = 11 : i64} {
  func.func @relu_conv1x1_kernel(%arg0: i32, %arg1: memref<1x120x784xf32, #tpu.memory_space<vmem>>, %arg2: memref<120x120xf32, #tpu.memory_space<vmem>>, %arg3: memref<1x120x784xf32, #tpu.memory_space<vmem>>) attributes {dimension_semantics = [#tpu.dimension_semantics<parallel>], iteration_bounds = array<i64: 1>, scalar_prefetch = 0 : i64, scratch_operands = 0 : i64, tpu.core_type = #tpu.core_type<tc>, window_params = [{transform_indices = @transform_0, window_bounds = array<i64: 1, 120, 784>}, {pipeline_mode = #tpu.pipeline_mode<synchronous>, transform_indices = @transform_1, window_bounds = array<i64: 120, 120>}, {transform_indices = @transform_2, window_bounds = array<i64: 1, 120, 784>}]} {
    %c0 = arith.constant 0 : index
    %c0_0 = arith.constant 0 : index
    %c0_1 = arith.constant 0 : index
    %0 = vector.load %arg1[%c0, %c0_0, %c0_1] : memref<1x120x784xf32, #tpu.memory_space<vmem>>, vector<1x120x784xf32>
    %1 = vector.shape_cast %0 : vector<1x120x784xf32> to vector<120x784xf32>
    %cst = arith.constant 0.000000e+00 : f32
    %2 = vector.broadcast %cst : f32 to vector<120x784xf32>
    %3 = arith.maximumf %1, %2 : vector<120x784xf32>
    %c0_2 = arith.constant 0 : index
    %c0_3 = arith.constant 0 : index
    %4 = vector.load %arg2[%c0_2, %c0_3] : memref<120x120xf32, #tpu.memory_space<vmem>>, vector<120x120xf32>
    %cst_4 = arith.constant dense<0.000000e+00> : vector<120x784xf32>
    %5 = tpu.matmul %4, %3, %cst_4 {dimension_numbers = #tpu.dot_dimension_numbers<[1], [0], [0], [1], [0, 0, 1, 1], [], []>} : vector<120x120xf32>, vector<120x784xf32>, vector<120x784xf32> -> vector<120x784xf32>
    %c0_5 = arith.constant 0 : index
    %c0_6 = arith.constant 0 : index
    %c0_7 = arith.constant 0 : index
    %6 = vector.load %arg3[%c0_5, %c0_6, %c0_7] : memref<1x120x784xf32, #tpu.memory_space<vmem>>, vector<1x120x784xf32>
    %7 = vector.shape_cast %6 : vector<1x120x784xf32> to vector<120x784xf32>
    %8 = vector.shape_cast %5 : vector<120x784xf32> to vector<1x120x784xf32>
    tpu.vector_store %arg3[%c0_5, %c0_6, %c0_7], %8 {strides = array<i32>} : memref<1x120x784xf32, #tpu.memory_space<vmem>>, vector<1x120x784xf32>,
    return
  }
  func.func @transform_0(%arg0: i32) -> (i32, i32, i32) {
    %c0_i32 = arith.constant 0 : i32
    %c0_i32_0 = arith.constant 0 : i32
    %c0_i32_1 = arith.constant 0 : i32
    return %arg0, %c0_i32, %c0_i32_0 : i32, i32, i32
  }
  func.func @transform_1(%arg0: i32) -> (i32, i32) {
    %c0_i32 = arith.constant 0 : i32
    %c0_i32_0 = arith.constant 0 : i32
    %c0_i32_1 = arith.constant 0 : i32
    return %c0_i32, %c0_i32_0 : i32, i32
  }
  func.func @transform_2(%arg0: i32) -> (i32, i32, i32) {
    %c0_i32 = arith.constant 0 : i32
    %c0_i32_0 = arith.constant 0 : i32
    %c0_i32_1 = arith.constant 0 : i32
    return %arg0, %c0_i32, %c0_i32_0 : i32, i32, i32
  }
}

</mosaic_0001>

<bundles_post_ra>
// kernel: tpu_custom_call.1
= control target key start
LH: loop header
LB: loop body
LE: loop exit
PB: predicated region body
PF: predicated region fallthrough
CT: control target
= control target key end

     0   :  { %v1270_v3 = vmov 0.0   ;;  %vm236_vm0 = vcmask 982016   ;;  %vm1272_vm1 = vmmov 0   ;;  %vm893_vm2 = vcmask 130048   ;;  %s2211_s0 = inlined_call_operand.vmem [shape: f32[1,120,784], index: 0, kind: input, shape index: {}]   ;;  %s2212_s1 = inlined_call_operand.vmem [shape: f32[120,120], index: 1, kind: input, shape index: {}]   ;;  %s2213_s2 = inlined_call_operand.vmem [shape: f32[1,120,784], index: 2, kind: output, shape index: {}]  }
   0x1   :  { %v12_v0 = vld [vmem:[%s2211_s0 + $0x8] sm:$0xff]  ;;  %v19_v1 = vld [vmem:[%s2211_s0 + $0x40] sm:$0xff]  ;;  %346 = vmatprep.mubr.f32.mxu0 %v1270_v3  ;;  %501 = vmatprep.mubr.f32.mxu1 %v1270_v3  ;;  %v18_v6 = vld [vmem:[%s2211_s0 + $0x38] sm:$0xff] }
   0x2   :  { %v11_v2 = vld [vmem:[%s2211_s0] sm:$0xff]  ;;  %v117_v4 = vmax.f32 %v12_v0, 0.0  ;;  %v124_v5 = vmax.f32 %v19_v1, 0.0  ;;  %v14_v8 = vld [vmem:[%s2211_s0 + $0x18] sm:$0xff]  ;;  %v21_v9 = vld [vmem:[%s2211_s0 + $0x50] sm:$0xff]  ;;  %v123_v10 = vmax.f32 %v18_v6, 0.0 }
   0x3   :  { %v116_v7 = vmax.f32 %v11_v2, 0.0  ;;  %v119_v11 = vmax.f32 %v14_v8, 0.0  ;;  %v126_v12 = vmax.f32 %v21_v9, 0.0  ;;  %v13_v13 = vld [vmem:[%s2211_s0 + $0x10] sm:$0xff]  ;;  %v20_v14 = vld [vmem:[%s2211_s0 + $0x48] sm:$0xff]  ;;  %v26_v15 = vld [vmem:[%s2211_s0 + $0x78] sm:$0xff] }
   0x4   :  { %v1162_v16 = vpack.c.bf16 %v124_v5, %v117_v4  ;;  %v118_v17 = vmax.f32 %v13_v13, 0.0  ;;  %v125_v18 = vmax.f32 %v20_v14, 0.0  ;;  %v33_v19 = vld [vmem:[%s2211_s0 + $0xb0] sm:$0xff]  ;;  %v131_v20 = vmax.f32 %v26_v15, 0.0  ;;  %v32_v22 = vld [vmem:[%s2211_s0 + $0xa8] sm:$0xff]  ;;  %v35_v28 = vld [vmem:[%s2211_s0 + $0xc0] sm:$0xff] }
   0x5   :  { %v25_v21 = vld [vmem:[%s2211_s0 + $0x70] sm:$0xff]  ;;  %v1164_v23 = vpack.c.bf16 %v123_v10, %v116_v7  ;;  %v1190_v24 = vpack.c.bf16 %v126_v12, %v119_v11  ;;  %v138_v25 = vmax.f32 %v33_v19, 0.0  ;;  %v28_v27 = vld [vmem:[%s2211_s0 + $0x88] sm:$0xff]  ;;  %v27_v29 = vld [vmem:[%s2211_s0 + $0x80] sm:$0xff]  ;;  %v137_v31 = vmax.f32 %v32_v22, 0.0 }
   0x6   :  { %v130_v26 = vmax.f32 %v25_v21, 0.0  ;;  %1163 = vmatprep.subr.bf16.mxu0 %v1162_v16  ;;  %v1192_v30 = vpack.c.bf16 %v125_v18, %v118_v17  ;;  %v133_v32 = vmax.f32 %v28_v27, 0.0  ;;  %v140_v33 = vmax.f32 %v35_v28, 0.0  ;;  %v34_v34 = vld [vmem:[%s2211_s0 + $0xb8] sm:$0xff]  ;;  %v40_v35 = vld [vmem:[%s2211_s0 + $0xe8] sm:$0xff]  ;;  %v47_v36 = vld [vmem:[%s2211_s0 + $0x120] sm:$0xff] }
   0x7   :  { %1165 = vmatpush1.bf16.msra.mxu0 %v1164_v23  ;;  %1191 = vmatprep.subr.bf16.mxu1 %v1190_v24  ;;  %v1166_v37 = vpack.c.bf16 %v138_v25, %v131_v20  ;;  %v132_v38 = vmax.f32 %v27_v29, 0.0  ;;  %v139_v39 = vmax.f32 %v34_v34, 0.0  ;;  %v145_v40 = vmax.f32 %v40_v35, 0.0  ;;  %v39_v41 = vld [vmem:[%s2211_s0 + $0xe0] sm:$0xff]  ;;  %v46_v42 = vld [vmem:[%s2211_s0 + $0x118] sm:$0xff]  ;;  %v49_v48 = vld [vmem:[%s2211_s0 + $0x130] sm:$0xff] }
   0x8   :  { %v42_v43 = vld [vmem:[%s2211_s0 + $0xf8] sm:$0xff]  ;;  %1193 = vmatpush1.bf16.msra.mxu1 %v1192_v30  ;;  %v1168_v44 = vpack.c.bf16 %v137_v31, %v130_v26  ;;  %v1194_v45 = vpack.c.bf16 %v140_v33, %v133_v32  ;;  %v152_v46 = vmax.f32 %v47_v36, 0.0  ;;  %v144_v47 = vmax.f32 %v39_v41, 0.0  ;;  %v41_v49 = vld [vmem:[%s2211_s0 + $0xf0] sm:$0xff]  ;;  %v48_v50 = vld [vmem:[%s2211_s0 + $0x128] sm:$0xff] }
   0x9   :  { %1167 = vmatprep.subr.bf16.mxu0 %v1166_v37  ;;  %v1196_v51 = vpack.c.bf16 %v139_v39, %v132_v38  ;;  %v151_v52 = vmax.f32 %v46_v42, 0.0  ;;  %v147_v53 = vmax.f32 %v42_v43, 0.0  ;;  %v154_v54 = vmax.f32 %v49_v48, 0.0  ;;  %v54_v55 = vld [vmem:[%s2211_s0 + $0x158] sm:$0xff]  ;;  %v61_v56 = vld [vmem:[%s2211_s0 + $0x190] sm:$0xff]  ;;  %v60_v62 = vld [vmem:[%s2211_s0 + $0x188] sm:$0xff] }
   0xa   :  { %v53_v57 = vld [vmem:[%s2211_s0 + $0x150] sm:$0xff]  ;;  %1195 = vmatprep.subr.bf16.mxu1 %v1194_v45  ;;  %v1170_v58 = vpack.c.bf16 %v152_v46, %v145_v40  ;;  %v146_v59 = vmax.f32 %v41_v49, 0.0  ;;  %v153_v60 = vmax.f32 %v48_v50, 0.0  ;;  %v159_v61 = vmax.f32 %v54_v55, 0.0  ;;  %v56_v63 = vld [vmem:[%s2211_s0 + $0x168] sm:$0xff]  ;;  %v63_v0 = vld [vmem:[%s2211_s0 + $0x1a0] sm:$0xff] }
   0xb   :  { %1169 = vmatpush1.bf16.msra.mxu0 %v1168_v44  ;;  %v1172_v1 = vpack.c.bf16 %v151_v52, %v144_v47  ;;  %v1198_v2 = vpack.c.bf16 %v154_v54, %v147_v53  ;;  %v166_v4 = vmax.f32 %v61_v56, 0.0  ;;  %v158_v5 = vmax.f32 %v53_v57, 0.0  ;;  %v55_v6 = vld [vmem:[%s2211_s0 + $0x160] sm:$0xff]  ;;  %v62_v7 = vld [vmem:[%s2211_s0 + $0x198] sm:$0xff]  ;;  %v68_v8 = vld [vmem:[%s2211_s0 + $0x1c8] sm:$0xff] }
   0xc   :  { %1197 = vmatpush1.bf16.msra.mxu1 %v1196_v51  ;;  %1171 = vmatprep.subr.bf16.mxu0 %v1170_v58  ;;  %v1200_v9 = vpack.c.bf16 %v153_v60, %v146_v59  ;;  %v165_v10 = vmax.f32 %v60_v62, 0.0  ;;  %v161_v11 = vmax.f32 %v56_v63, 0.0  ;;  %v168_v12 = vmax.f32 %v63_v0, 0.0  ;;  %v75_v13 = vld [vmem:[%s2211_s0 + $0x200] sm:$0xff]  ;;  %v74_v15 = vld [vmem:[%s2211_s0 + $0x1f8] sm:$0xff]  ;;  %v77_v21 = vld [vmem:[%s2211_s0 + $0x210] sm:$0xff] }
   0xd   :  { %v67_v14 = vld [vmem:[%s2211_s0 + $0x1c0] sm:$0xff]  ;;  %1199 = vmatprep.subr.bf16.mxu1 %v1198_v2  ;;  %v1174_v16 = vpack.c.bf16 %v166_v4, %v159_v61  ;;  %v160_v17 = vmax.f32 %v55_v6, 0.0  ;;  %v167_v18 = vmax.f32 %v62_v7, 0.0  ;;  %v173_v19 = vmax.f32 %v68_v8, 0.0  ;;  %v70_v20 = vld [vmem:[%s2211_s0 + $0x1d8] sm:$0xff]  ;;  %v69_v22 = vld [vmem:[%s2211_s0 + $0x1d0] sm:$0xff] }
   0xe   :  { %v1176_v23 = vpack.c.bf16 %v165_v10, %v158_v5  ;;  %v1202_v24 = vpack.c.bf16 %v168_v12, %v161_v11  ;;  %v180_v25 = vmax.f32 %v75_v13, 0.0  ;;  %v172_v26 = vmax.f32 %v67_v14, 0.0  ;;  %v76_v27 = vld [vmem:[%s2211_s0 + $0x208] sm:$0xff]  ;;  %v82_v28 = vld [vmem:[%s2211_s0 + $0x238] sm:$0xff]  ;;  %v89_v29 = vld [vmem:[%s2211_s0 + $0x270] sm:$0xff] }
   0xf   :  { %1173 = vmatpush1.bf16.msra.mxu0 %v1172_v1  ;;  %v1204_v30 = vpack.c.bf16 %v167_v18, %v160_v17  ;;  %v179_v31 = vmax.f32 %v74_v15, 0.0  ;;  %v175_v32 = vmax.f32 %v70_v20, 0.0  ;;  %v182_v33 = vmax.f32 %v77_v21, 0.0  ;;  %v81_v34 = vld [vmem:[%s2211_s0 + $0x230] sm:$0xff]  ;;  %v84_v35 = vld [vmem:[%s2211_s0 + $0x248] sm:$0xff]  ;;  %v91_v41 = vld [vmem:[%s2211_s0 + $0x280] sm:$0xff] }
  0x10   :  { %1201 = vmatpush1.bf16.msra.mxu1 %v1200_v9  ;;  %1175 = vmatprep.subr.bf16.mxu0 %v1174_v16  ;;  %v1178_v36 = vpack.c.bf16 %v180_v25, %v173_v19  ;;  %v174_v37 = vmax.f32 %v69_v22, 0.0  ;;  %v181_v38 = vmax.f32 %v76_v27, 0.0  ;;  %v187_v39 = vmax.f32 %v82_v28, 0.0  ;;  %v88_v40 = vld [vmem:[%s2211_s0 + $0x268] sm:$0xff]  ;;  %v83_v42 = vld [vmem:[%s2211_s0 + $0x240] sm:$0xff]  ;;  %v90_v45 = vld [vmem:[%s2211_s0 + $0x278] sm:$0xff] }
  0x11   :  { %1203 = vmatprep.subr.bf16.mxu1 %v1202_v24  ;;  %v1206_v43 = vpack.c.bf16 %v182_v33, %v175_v32  ;;  %v194_v44 = vmax.f32 %v89_v29, 0.0  ;;  %v96_v46 = vld [vmem:[%s2211_s0 + $0x2a8] sm:$0xff]  ;;  %v103_v47 = vld [vmem:[%s2211_s0 + $0x2e0] sm:$0xff]  ;;  %v1180_v48 = vpack.c.bf16 %v179_v31, %v172_v26  ;;  %v189_v49 = vmax.f32 %v84_v35, 0.0  ;;  %v98_v51 = vld [vmem:[%s2211_s0 + $0x2b8] sm:$0xff] }
  0x12   :  { %v196_v50 = vmax.f32 %v91_v41, 0.0  ;;  %v105_v52 = vld [vmem:[%s2211_s0 + $0x2f0] sm:$0xff]  ;;  %v1208_v53 = vpack.c.bf16 %v181_v38, %v174_v37  ;;  %v186_v55 = vmax.f32 %v81_v34, 0.0  ;;  %v193_v56 = vmax.f32 %v88_v40, 0.0  ;;  %v95_v61 = vld [vmem:[%s2211_s0 + $0x2a0] sm:$0xff]  ;;  %v102_v62 = vld [vmem:[%s2211_s0 + $0x2d8] sm:$0xff] }
  0x13   :  { %1177 = vmatpush1.bf16.msra.mxu0 %v1176_v23  ;;  %v1182_v54 = vpack.c.bf16 %v194_v44, %v187_v39  ;;  %v188_v57 = vmax.f32 %v83_v42, 0.0  ;;  %v195_v58 = vmax.f32 %v90_v45, 0.0  ;;  %v201_v59 = vmax.f32 %v96_v46, 0.0  ;;  %v97_v2 = vld [vmem:[%s2211_s0 + $0x2b0] sm:$0xff]  ;;  %v104_v4 = vld [vmem:[%s2211_s0 + $0x2e8] sm:$0xff]  ;;  %v110_v13 = vld [vmem:[%s2211_s0 + $0x318] sm:$0xff] }
  0x14   :  { %1205 = vmatpush1.bf16.msra.mxu1 %v1204_v30  ;;  %1179 = vmatprep.subr.bf16.mxu0 %v1178_v36  ;;  %v208_v60 = vmax.f32 %v103_v47, 0.0  ;;  %v1210_v63 = vpack.c.bf16 %v196_v50, %v189_v49  ;;  %v203_v0 = vmax.f32 %v98_v51, 0.0  ;;  %v210_v1 = vmax.f32 %v105_v52, 0.0  ;;  %v112_v14 = vld [vmem:[%s2211_s0 + $0x328] sm:$0xff]  ;;  %v23_v16 = vld [vmem:[%s2211_s0 + $0x60] sm:$0xff]  ;;  %v22_v19 = vld [vmem:[%s2211_s0 + $0x58] sm:$0xff] }
  0x15   :  { %1207 = vmatprep.subr.bf16.mxu1 %v1206_v43  ;;  %v1184_v5 = vpack.c.bf16 %v193_v56, %v186_v55  ;;  %v200_v6 = vmax.f32 %v95_v61, 0.0  ;;  %v207_v7 = vmax.f32 %v102_v62, 0.0  ;;  %v1212_v8 = vpack.c.bf16 %v195_v58, %v188_v57  ;;  %v16_v15 = vld [vmem:[%s2211_s0 + $0x28] sm:$0xff]  ;;  %v15_v18 = vld [vmem:[%s2211_s0 + $0x20] sm:$0xff]  ;;  %v109_v22 = vld [vmem:[%s2211_s0 + $0x310] sm:$0xff] }
  0x16   :  { %v1186_v9 = vpack.c.bf16 %v208_v60, %v201_v59  ;;  %v202_v10 = vmax.f32 %v97_v2, 0.0  ;;  %v209_v11 = vmax.f32 %v104_v4, 0.0  ;;  %v1214_v12 = vpack.c.bf16 %v210_v1, %v203_v0  ;;  %v17_v23 = vld [vmem:[%s2211_s0 + $0x30] sm:$0xff]  ;;  %v24_v24 = vld [vmem:[%s2211_s0 + $0x68] sm:$0xff]  ;;  %v111_v26 = vld [vmem:[%s2211_s0 + $0x320] sm:$0xff] }
  0x17   :  { %1181 = vmatpush1.bf16.msra.mxu0 %v1180_v48  ;;  %v1188_v17 = vpack.c.bf16 %v207_v7, %v200_v6  ;;  %v215_v21 = vmax.f32 %v110_v13, 0.0  ;;  %v217_v25 = vmax.f32 %v112_v14, 0.0  ;;  %v121_v27 = vmax.f32 %v16_v15, 0.0  ;;  %v30_v34 = vld [vmem:[%s2211_s0 + $0x98] sm:$0xff]  ;;  %v37_v35 = vld [vmem:[%s2211_s0 + $0xd0] sm:$0xff]  ;;  %v36_v38 = vld [vmem:[%s2211_s0 + $0xc8] sm:$0xff] }
  0x18   :  { %1209 = vmatpush1.bf16.msra.mxu1 %v1208_v53  ;;  %1183 = vmatprep.subr.bf16.mxu0 %v1182_v54  ;;  %v1216_v20 = vpack.c.bf16 %v209_v11, %v202_v10  ;;  %v128_v28 = vmax.f32 %v23_v16, 0.0  ;;  %v120_v29 = vmax.f32 %v15_v18, 0.0  ;;  %v127_v30 = vmax.f32 %v22_v19, 0.0  ;;  %v29_v37 = vld [vmem:[%s2211_s0 + $0x90] sm:$0xff]  ;;  %v1503_v39 = vld [vmem:[%s2212_s1] sm:$0xff]  ;;  %v38_v42 = vld [vmem:[%s2211_s0 + $0xd8] sm:$0xff] }
  0x19   :  { %1211 = vmatprep.subr.bf16.mxu1 %v1210_v63  ;;  %v214_v31 = vmax.f32 %v109_v22, 0.0  ;;  %v122_v32 = vmax.f32 %v17_v23, 0.0  ;;  %v129_v33 = vmax.f32 %v24_v24, 0.0  ;;  %v216_v36 = vmax.f32 %v111_v26, 0.0  ;;  %v31_v41 = vld [vmem:[%s2211_s0 + $0xa0] sm:$0xff]  ;;  %v44_v49 = vld [vmem:[%s2211_s0 + $0x108] sm:$0xff] }
  0x1a   :  { %v1218_v40 = vpack.c.bf16 %v128_v28, %v121_v27  ;;  %v1220_v43 = vpack.c.bf16 %v127_v30, %v120_v29  ;;  %v135_v44 = vmax.f32 %v30_v34, 0.0  ;;  %v142_v45 = vmax.f32 %v37_v35, 0.0  ;;  %v51_v50 = vld [vmem:[%s2211_s0 + $0x140] sm:$0xff]  ;;  %v50_v54 = vld [vmem:[%s2211_s0 + $0x138] sm:$0xff]  ;;  %v1530_v55 = vld [vmem:[%s2212_s1 + $0x8] sm:$0xff] }
  0x1b   :  { %1185 = vmatpush1.bf16.msra.mxu0 %v1184_v5  ;;  %v1247_v46 = vpack.c.bf16 %v129_v33, %v122_v32  ;;  %v134_v47 = vmax.f32 %v29_v37, 0.0  ;;  %v141_v48 = vmax.f32 %v36_v38, 0.0  ;;  %v136_v51 = vmax.f32 %v31_v41, 0.0  ;;  %v43_v53 = vld [vmem:[%s2211_s0 + $0x100] sm:$0xff]  ;;  %v45_v56 = vld [vmem:[%s2211_s0 + $0x110] sm:$0xff]  ;;  %v52_v57 = vld [vmem:[%s2211_s0 + $0x148] sm:$0xff] }
  0x1c   :  { %1213 = vmatpush1.bf16.msra.mxu1 %v1212_v8  ;;  %1187 = vmatprep.subr.bf16.mxu0 %v1186_v9  ;;  %v143_v52 = vmax.f32 %v38_v42, 0.0  ;;  %v1271_v58 = vmov 0.0|0.0   ;;  %v1222_v59 = vpack.c.bf16 %v142_v45, %v135_v44  ;;  %v149_v60 = vmax.f32 %v44_v49, 0.0  ;;  %v58_v1 = vld [vmem:[%s2211_s0 + $0x178] sm:$0xff]  ;;  %v65_v2 = vld [vmem:[%s2211_s0 + $0x1b0] sm:$0xff]  ;;  %v64_v8 = vld [vmem:[%s2211_s0 + $0x1a8] sm:$0xff] }
  0x1d   :  { %1215 = vmatprep.subr.bf16.mxu1 %v1214_v12  ;;  %v156_v61 = vmax.f32 %v51_v50, 0.0  ;;  %v1224_v62 = vpack.c.bf16 %v141_v48, %v134_v47  ;;  %v148_v63 = vmax.f32 %v43_v53, 0.0  ;;  %v155_v0 = vmax.f32 %v50_v54, 0.0  ;;  %v57_v7 = vld [vmem:[%s2211_s0 + $0x170] sm:$0xff]  ;;  %v59_v10 = vld [vmem:[%s2211_s0 + $0x180] sm:$0xff]  ;;  %v66_v11 = vld [vmem:[%s2211_s0 + $0x1b8] sm:$0xff] }
  0x1e   :  { %v1250_v4 = vpack.c.bf16 %v143_v52, %v136_v51  ;;  %v150_v5 = vmax.f32 %v45_v56, 0.0  ;;  %v157_v6 = vmax.f32 %v52_v57, 0.0  ;;  %v1561_v9 = vld [vmem:[%s2212_s1 + $0x10] sm:$0xff]  ;;  %v163_v13 = vmax.f32 %v58_v1, 0.0  ;;  %v72_v18 = vld [vmem:[%s2211_s0 + $0x1e8] sm:$0xff]  ;;  %v79_v19 = vld [vmem:[%s2211_s0 + $0x220] sm:$0xff] }
  0x1f   :  { %1189 = vmatpush1.bf16.msra.mxu0 %v1188_v17  ;;  %v1226_v12 = vpack.c.bf16 %v156_v61, %v149_v60  ;;  %v170_v14 = vmax.f32 %v65_v2, 0.0  ;;  %v1228_v15 = vpack.c.bf16 %v155_v0, %v148_v63  ;;  %v162_v16 = vmax.f32 %v57_v7, 0.0  ;;  %v71_v23 = vld [vmem:[%s2211_s0 + $0x1e0] sm:$0xff]  ;;  %v78_v24 = vld [vmem:[%s2211_s0 + $0x218] sm:$0xff]  ;;  %v73_v26 = vld [vmem:[%s2211_s0 + $0x1f0] sm:$0xff] }
  0x20   :  { %1217 = vmatpush1.bf16.msra.mxu1 %v1216_v20  ;;  %310 = vmatprep.subr.mxu0 %v215_v21  ;;  %v169_v17 = vmax.f32 %v64_v8, 0.0  ;;  %v1253_v20 = vpack.c.bf16 %v157_v6, %v150_v5  ;;  %v164_v21 = vmax.f32 %v59_v10, 0.0  ;;  %v171_v22 = vmax.f32 %v66_v11, 0.0  ;;  %v80_v27 = vld [vmem:[%s2211_s0 + $0x228] sm:$0xff]  ;;  %v86_v34 = vld [vmem:[%s2211_s0 + $0x258] sm:$0xff]  ;;  %v93_v35 = vld [vmem:[%s2211_s0 + $0x290] sm:$0xff] }
  0x21   :  { %465 = vmatprep.subr.mxu1 %v217_v25  ;;  %v1591_v25 = vld [vmem:[%s2212_s1 + $0x18] sm:$0xff]  ;;  %v1230_v28 = vpack.c.bf16 %v170_v14, %v163_v13  ;;  %v177_v29 = vmax.f32 %v72_v18, 0.0  ;;  %v184_v30 = vmax.f32 %v79_v19, 0.0  ;;  %v176_v32 = vmax.f32 %v71_v23, 0.0  ;;  %v92_v41 = vld [vmem:[%s2211_s0 + $0x288] sm:$0xff]  ;;  %v1621_v42 = vld [vmem:[%s2212_s1 + $0x20] sm:$0xff] }
  0x22   :  { %v183_v33 = vmax.f32 %v78_v24, 0.0  ;;  %v178_v37 = vmax.f32 %v73_v26, 0.0  ;;  %v185_v38 = vmax.f32 %v80_v27, 0.0  ;;  %v94_v44 = vld [vmem:[%s2211_s0 + $0x298] sm:$0xff]  ;;  %v198_v47 = vmax.f32 %v93_v35, 0.0  ;;  %v100_v51 = vld [vmem:[%s2211_s0 + $0x2c8] sm:$0xff] }
  0x23   :  { %311 = vmatpush1.msra.mxu0 %v214_v31  ;;  %v1232_v31 = vpack.c.bf16 %v169_v17, %v162_v16  ;;  %v1234_v45 = vpack.c.bf16 %v184_v30, %v177_v29  ;;  %v197_v50 = vmax.f32 %v92_v41, 0.0  ;;  %v107_v52 = vld [vmem:[%s2211_s0 + $0x300] sm:$0xff]  ;;  %v199_v56 = vmax.f32 %v94_v44, 0.0  ;;  %v1651_v60 = vld [vmem:[%s2212_s1 + $0x28] sm:$0xff]  ;;  %v101_v61 = vld [vmem:[%s2211_s0 + $0x2d0] sm:$0xff] }
  0x24   :  { %997 = vmatmul.mubr.msk.f32.vlgmr.msra.gmra.mrb[0].mxu0 %vm236_vm0, %v1503_v39  ;;  %466 = vmatpush1.msra.mxu1 %v216_v36  ;;  %v1256_v36 = vpack.c.bf16 %v171_v22, %v164_v21  ;;  %v1236_v48 = vpack.c.bf16 %v183_v33, %v176_v32  ;;  %v1259_v53 = vpack.c.bf16 %v185_v38, %v178_v37  ;;  %v99_v57 = vld [vmem:[%s2211_s0 + $0x2c0] sm:$0xff]  ;;  %v205_v0 = vmax.f32 %v100_v51, 0.0  ;;  %v1669_v10 = vld [vmem:[%s2212_s1 + $0x30] sm:$0xff]  ;;  %v114_v13 = vld [vmem:[%s2211_s0 + $0x338] sm:$0xff] }
  0x25   :  { %1219 = vmatprep.subr.bf16.mxu0 %v1218_v40  ;;  %1012 = vmatmul.mubr.msk.f32.vlgmr.msra.gmra.mrb[0].mxu1 %vm236_vm0, %v1503_v39  ;;  %v85_v40 = vld [vmem:[%s2211_s0 + $0x250] sm:$0xff]  ;;  %v212_v1 = vmax.f32 %v107_v52, 0.0  ;;  %v206_v7 = vmax.f32 %v101_v61, 0.0  ;;  %v1687_v16 = vld [vmem:[%s2212_s1 + $0x38] sm:$0xff]  ;;  %v115_v17 = vld [vmem:[%s2211_s0 + $0x340] sm:$0xff]  ;;  %v219_v18 = vmax.f32 %v114_v13, 0.0 }
  0x26   :  { %1221 = vmatpush1.bf16.msra.mxu0 %v1220_v43  ;;  %1246 = vmatprep.subr.bf16.mxu1 %v1271_v58  ;;  %v87_v43 = vld [vmem:[%s2211_s0 + $0x260] sm:$0xff]  ;;  %v190_v49 = vmax.f32 %v85_v40, 0.0  ;;  %v1725_v22 = vld [vmem:[%s2212_s1 + $0x50] sm:$0xff]  ;;  %v1736_v23 = vld [vmem:[%s2212_s1 + $0x58] sm:$0xff] }
  0x27   :  { %1248 = vmatpush3.bf16.msra.mxu1 %v1247_v46  ;;  %352 = vmatprep.mubr.f32.mxu0 %v1270_v3  ;;  %v191_v46 = vmax.f32 %v86_v34, 0.0  ;;  %v192_v54 = vmax.f32 %v87_v43, 0.0  ;;  %v1242_v11 = vpack.c.bf16 %v212_v1, %v205_v0  ;;  %v1702_v21 = vld [vmem:[%s2212_s1 + $0x40] sm:$0xff]  ;;  %v1758_v26 = vld [vmem:[%s2212_s1 + $0x68] sm:$0xff]  ;;  %v1769_v27 = vld [vmem:[%s2212_s1 + $0x70] sm:$0xff] }
  0x28   :  { %998 = vmatmul.mubr.msk.f32.gmra.mrb[2].mxu0 %vm236_vm0, %v1530_v55  ;;  %507 = vmatprep.mubr.f32.mxu1 %v1270_v3  ;;  %v1240_v2 = vpack.c.bf16 %v197_v50, %v190_v49  ;;  %v1747_v24 = vld [vmem:[%s2212_s1 + $0x60] sm:$0xff] }
  0x29   :  { %1013 = vmatmul.mubr.msk.f32.gmra.mrb[2].mxu1 %vm236_vm0, %v1530_v55  ;;  %358 = vmatprep.mubr.f32.mxu0 %v1270_v3  ;;  %v1238_v63 = vpack.c.bf16 %v198_v47, %v191_v46  ;;  %v1262_v6 = vpack.c.bf16 %v199_v56, %v192_v54 }
  0x2a   :  { %513 = vmatprep.mubr.f32.mxu1 %v1270_v3  ;;  %1223 = vmatprep.subr.bf16.mxu0 %v1222_v59  ;;  %v106_v59 = vld [vmem:[%s2211_s0 + $0x2f8] sm:$0xff] }
  0x2b   :  { %1225 = vmatpush1.bf16.msra.mxu0 %v1224_v62  ;;  %1249 = vmatprep.subr.bf16.mxu1 %v1271_v58  ;;  %v108_v62 = vld [vmem:[%s2211_s0 + $0x308] sm:$0xff]  ;;  %v211_v5 = vmax.f32 %v106_v59, 0.0 }
  0x2c   :  { %999 = vmatmul.mubr.msk.f32.gmra.mrb[4].mxu0 %vm236_vm0, %v1561_v9  ;;  %1251 = vmatpush3.bf16.msra.mxu1 %v1250_v4  ;;  %v204_v4 = vmax.f32 %v99_v57, 0.0  ;;  %v213_v8 = vmax.f32 %v108_v62, 0.0 }
  0x2d   :  { %1014 = vmatmul.mubr.msk.f32.gmra.mrb[4].mxu1 %vm236_vm0, %v1561_v9  ;;  %364 = vmatprep.mubr.f32.mxu0 %v1270_v3 }
  0x2e   :  { %519 = vmatprep.mubr.f32.mxu1 %v1270_v3  ;;  %1227 = vmatprep.subr.bf16.mxu0 %v1226_v12  ;;  %v1244_v12 = vpack.c.bf16 %v211_v5, %v204_v4  ;;  %v1265_v14 = vpack.c.bf16 %v213_v8, %v206_v7 }
  0x2f   :  { %1229 = vmatpush1.bf16.msra.mxu0 %v1228_v15  ;;  %1252 = vmatprep.subr.bf16.mxu1 %v1271_v58  ;;  %v113_v15 = vld [vmem:[%s2211_s0 + $0x330] sm:$0xff] }
  0x30   :  { %1000 = vmatmul.mubr.msk.f32.gmra.mrb[6].mxu0 %vm236_vm0, %v1591_v25  ;;  %1254 = vmatpush3.bf16.msra.mxu1 %v1253_v20  ;;  %v218_v19 = vmax.f32 %v113_v15, 0.0  ;;  %v220_v20 = vmax.f32 %v115_v17, 0.0 }
  0x31   :  { %1015 = vmatmul.mubr.msk.f32.gmra.mrb[6].mxu1 %vm236_vm0, %v1591_v25  ;;  %370 = vmatprep.mubr.f32.mxu0 %v1270_v3 }
  0x32   :  { %525 = vmatprep.mubr.f32.mxu1 %v1270_v3  ;;  %1231 = vmatprep.subr.bf16.mxu0 %v1230_v28 }
  0x33   :  { %1233 = vmatpush1.bf16.msra.mxu0 %v1232_v31  ;;  %1255 = vmatprep.subr.bf16.mxu1 %v1271_v58 }
  0x34   :  { %1001 = vmatmul.mubr.msk.f32.gmra.mrb[8].mxu0 %vm236_vm0, %v1621_v42  ;;  %1257 = vmatpush3.bf16.msra.mxu1 %v1256_v36 }
  0x35   :  { %1016 = vmatmul.mubr.msk.f32.gmra.mrb[8].mxu1 %vm236_vm0, %v1621_v42  ;;  %376 = vmatprep.mubr.f32.mxu0 %v1270_v3 }
  0x36   :  { %531 = vmatprep.mubr.f32.mxu1 %v1270_v3  ;;  %1235 = vmatprep.subr.bf16.mxu0 %v1234_v45 }
  0x37   :  { %1237 = vmatpush1.bf16.msra.mxu0 %v1236_v48  ;;  %1258 = vmatprep.subr.bf16.mxu1 %v1271_v58 }
  0x38   :  { %1002 = vmatmul.mubr.msk.f32.gmra.mrb[10].mxu0 %vm236_vm0, %v1651_v60  ;;  %1260 = vmatpush3.bf16.msra.mxu1 %v1259_v53 }
  0x39   :  { %1017 = vmatmul.mubr.msk.f32.gmra.mrb[10].mxu1 %vm236_vm0, %v1651_v60  ;;  %382 = vmatprep.mubr.f32.mxu0 %v1270_v3 }
  0x3a   :  { %537 = vmatprep.mubr.f32.mxu1 %v1270_v3  ;;  %1239 = vmatprep.subr.bf16.mxu0 %v1238_v63 }
  0x3b   :  { %1241 = vmatpush1.bf16.msra.mxu0 %v1240_v2  ;;  %1261 = vmatprep.subr.bf16.mxu1 %v1271_v58 }
  0x3c   :  { %1003 = vmatmul.mubr.msk.f32.gmra.mrb[12].mxu0 %vm236_vm0, %v1669_v10  ;;  %1263 = vmatpush3.bf16.msra.mxu1 %v1262_v6 }
  0x3d   :  { %1018 = vmatmul.mubr.msk.f32.gmra.mrb[12].mxu1 %vm236_vm0, %v1669_v10  ;;  %388 = vmatprep.mubr.f32.mxu0 %v1270_v3 }
  0x3e   :  { %543 = vmatprep.mubr.f32.mxu1 %v1270_v3  ;;  %1243 = vmatprep.subr.bf16.mxu0 %v1242_v11 }
  0x3f   :  { %1245 = vmatpush1.bf16.msra.mxu0 %v1244_v12  ;;  %1264 = vmatprep.subr.bf16.mxu1 %v1271_v58  ;;  %v1714_v58 = vld [vmem:[%s2212_s1 + $0x48] sm:$0xff] }
  0x40   :  { %1004 = vmatmul.mubr.msk.f32.gmra.mrb[14].mxu0 %vm236_vm0, %v1687_v16  ;;  %1266 = vmatpush3.bf16.msra.mxu1 %v1265_v14 }
  0x41   :  { %1019 = vmatmul.mubr.msk.f32.gmra.mrb[14].mxu1 %vm236_vm0, %v1687_v16  ;;  %394 = vmatprep.mubr.f32.mxu0 %v1270_v3 }
  0x42   :  { %549 = vmatprep.mubr.f32.mxu1 %v1270_v3  ;;  %620 = vmatprep.subr.mxu0 %v219_v18 }
  0x43   :  { %621 = vmatpush1.msra.mxu0 %v218_v19  ;;  %1115 = vmatprep.subr.mxu1 %v1270_v3 }
  0x44   :  { %1005 = vmatmul.mubr.msk.f32.gmra.mrb[16].mxu0 %vm236_vm0, %v1702_v21  ;;  %1116 = vmatpush3.msra.mxu1 %v220_v20 }
  0x45   :  { %1020 = vmatmul.mubr.msk.f32.gmra.mrb[16].mxu1 %vm236_vm0, %v1702_v21  ;;  %400 = vmatprep.mubr.f32.mxu0 %v1270_v3 }
  0x46   :  { %555 = vmatprep.mubr.f32.mxu1 %v1270_v3 }
  0x48   :  { %1006 = vmatmul.mubr.msk.f32.gmra.mrb[18].mxu0 %vm236_vm0, %v1714_v58 }
  0x49   :  { %1021 = vmatmul.mubr.msk.f32.gmra.mrb[18].mxu1 %vm236_vm0, %v1714_v58  ;;  %406 = vmatprep.mubr.f32.mxu0 %v1270_v3 }
  0x4a   :  { %561 = vmatprep.mubr.f32.mxu1 %v1270_v3 }
  0x4c   :  { %1007 = vmatmul.mubr.msk.f32.gmra.mrb[20].mxu0 %vm236_vm0, %v1725_v22 }
  0x4d   :  { %1022 = vmatmul.mubr.msk.f32.gmra.mrb[20].mxu1 %vm236_vm0, %v1725_v22  ;;  %412 = vmatprep.mubr.f32.mxu0 %v1270_v3 }
  0x4e   :  { %567 = vmatprep.mubr.f32.mxu1 %v1270_v3 }
  0x50   :  { %1008 = vmatmul.mubr.msk.f32.gmra.mrb[22].mxu0 %vm236_vm0, %v1736_v23 }
  0x51   :  { %1023 = vmatmul.mubr.msk.f32.gmra.mrb[22].mxu1 %vm236_vm0, %v1736_v23  ;;  %418 = vmatprep.mubr.f32.mxu0 %v1270_v3 }
  0x52   :  { %573 = vmatprep.mubr.f32.mxu1 %v1270_v3 }
  0x54   :  { %1009 = vmatmul.mubr.msk.f32.gmra.mrb[24].mxu0 %vm236_vm0, %v1747_v24 }
  0x55   :  { %1024 = vmatmul.mubr.msk.f32.gmra.mrb[24].mxu1 %vm236_vm0, %v1747_v24  ;;  %424 = vmatprep.mubr.f32.mxu0 %v1270_v3 }
  0x56   :  { %579 = vmatprep.mubr.f32.mxu1 %v1270_v3 }
  0x58   :  { %1010 = vmatmul.mubr.msk.f32.gmra.mrb[26].mxu0 %vm236_vm0, %v1758_v26 }
  0x59   :  { %1025 = vmatmul.mubr.msk.f32.gmra.mrb[26].mxu1 %vm236_vm0, %v1758_v26  ;;  %430 = vmatprep.mubr.f32.mxu0 %v1270_v3 }
  0x5a   :  { %585 = vmatprep.mubr.f32.mxu1 %v1270_v3 }
  0x5c   :  { %1011 = vmatmul.mubr.msk.f32.gmra.mrb[28].mxu0 %vm236_vm0, %v1769_v27 }
  0x5d   :  { %1026 = vmatmul.mubr.msk.f32.gmra.mrb[28].mxu1 %vm236_vm0, %v1769_v27  ;;  %656 = vmatprep.mubr.f32.mxu0 %v1270_v3 }
  0x5e   :  { %1117 = vmatprep.mubr.msk.f32.mxu1 %vm1272_vm1, %v1270_v3 }
  0x60   :  { %1027 = vmatmul.mubr.msk.f32.vlgmr.msra.gmra.mrb[30].mxu0 %vm236_vm0, %v1503_v39 }
  0x61   :  { %1118 = vmatmul.mubr.msk.f32.vlgmr.msra.gmra.mrb[30].mxu1 %vm236_vm0, %v1503_v39  ;;  %662 = vmatprep.mubr.f32.mxu0 %v1270_v3 }
  0x62   :  { %1120 = vmatprep.mubr.msk.f32.mxu1 %vm1272_vm1, %v1270_v3 }
  0x64   :  { %1028 = vmatmul.mubr.msk.f32.gmra.mrb[32].mxu0 %vm236_vm0, %v1530_v55 }
  0x65   :  { %1121 = vmatmul.mubr.msk.f32.gmra.mrb[32].mxu1 %vm236_vm0, %v1530_v55  ;;  %668 = vmatprep.mubr.f32.mxu0 %v1270_v3 }
  0x66   :  { %1123 = vmatprep.mubr.msk.f32.mxu1 %vm1272_vm1, %v1270_v3 }
  0x68   :  { %1029 = vmatmul.mubr.msk.f32.gmra.mrb[34].mxu0 %vm236_vm0, %v1561_v9 }
  0x69   :  { %1124 = vmatmul.mubr.msk.f32.gmra.mrb[34].mxu1 %vm236_vm0, %v1561_v9  ;;  %674 = vmatprep.mubr.f32.mxu0 %v1270_v3 }
  0x6a   :  { %1126 = vmatprep.mubr.msk.f32.mxu1 %vm1272_vm1, %v1270_v3 }
  0x6c   :  { %1030 = vmatmul.mubr.msk.f32.gmra.mrb[36].mxu0 %vm236_vm0, %v1591_v25 }
  0x6d   :  { %1127 = vmatmul.mubr.msk.f32.gmra.mrb[36].mxu1 %vm236_vm0, %v1591_v25  ;;  %680 = vmatprep.mubr.f32.mxu0 %v1270_v3 }
  0x6e   :  { %1129 = vmatprep.mubr.msk.f32.mxu1 %vm1272_vm1, %v1270_v3 }
  0x70   :  { %1031 = vmatmul.mubr.msk.f32.gmra.mrb[38].mxu0 %vm236_vm0, %v1621_v42 }
  0x71   :  { %1130 = vmatmul.mubr.msk.f32.gmra.mrb[38].mxu1 %vm236_vm0, %v1621_v42  ;;  %686 = vmatprep.mubr.f32.mxu0 %v1270_v3 }
  0x72   :  { %1132 = vmatprep.mubr.msk.f32.mxu1 %vm1272_vm1, %v1270_v3 }
  0x74   :  { %1032 = vmatmul.mubr.msk.f32.gmra.mrb[40].mxu0 %vm236_vm0, %v1651_v60 }
  0x75   :  { %1133 = vmatmul.mubr.msk.f32.gmra.mrb[40].mxu1 %vm236_vm0, %v1651_v60  ;;  %692 = vmatprep.mubr.f32.mxu0 %v1270_v3 }
  0x76   :  { %1135 = vmatprep.mubr.msk.f32.mxu1 %vm1272_vm1, %v1270_v3 }
  0x78   :  { %1033 = vmatmul.mubr.msk.f32.gmra.mrb[42].mxu0 %vm236_vm0, %v1669_v10 }
  0x79   :  { %1136 = vmatmul.mubr.msk.f32.gmra.mrb[42].mxu1 %vm236_vm0, %v1669_v10  ;;  %698 = vmatprep.mubr.f32.mxu0 %v1270_v3 }
  0x7a   :  { %1138 = vmatprep.mubr.msk.f32.mxu1 %vm1272_vm1, %v1270_v3 }
  0x7c   :  { %1034 = vmatmul.mubr.msk.f32.gmra.mrb[44].mxu0 %vm236_vm0, %v1687_v16 }
  0x7d   :  { %1139 = vmatmul.mubr.msk.f32.gmra.mrb[44].mxu1 %vm236_vm0, %v1687_v16  ;;  %704 = vmatprep.mubr.f32.mxu0 %v1270_v3 }
  0x7e   :  { %1141 = vmatprep.mubr.msk.f32.mxu1 %vm1272_vm1, %v1270_v3 }
  0x80   :  { %1035 = vmatmul.mubr.msk.f32.gmra.mrb[46].mxu0 %vm236_vm0, %v1702_v21 }
  0x81   :  { %1142 = vmatmul.mubr.msk.f32.gmra.mrb[46].mxu1 %vm236_vm0, %v1702_v21  ;;  %710 = vmatprep.mubr.f32.mxu0 %v1270_v3 }
  0x82   :  { %1144 = vmatprep.mubr.msk.f32.mxu1 %vm1272_vm1, %v1270_v3 }
  0x84   :  { %1036 = vmatmul.mubr.msk.f32.gmra.mrb[48].mxu0 %vm236_vm0, %v1714_v58 }
  0x85   :  { %1145 = vmatmul.mubr.msk.f32.gmra.mrb[48].mxu1 %vm236_vm0, %v1714_v58  ;;  %716 = vmatprep.mubr.f32.mxu0 %v1270_v3 }
  0x86   :  { %1147 = vmatprep.mubr.msk.f32.mxu1 %vm1272_vm1, %v1270_v3 }
  0x88   :  { %1037 = vmatmul.mubr.msk.f32.gmra.mrb[50].mxu0 %vm236_vm0, %v1725_v22 }
  0x89   :  { %1148 = vmatmul.mubr.msk.f32.gmra.mrb[50].mxu1 %vm236_vm0, %v1725_v22  ;;  %722 = vmatprep.mubr.f32.mxu0 %v1270_v3 }
  0x8a   :  { %1150 = vmatprep.mubr.msk.f32.mxu1 %vm1272_vm1, %v1270_v3 }
  0x8c   :  { %1038 = vmatmul.mubr.msk.f32.gmra.mrb[52].mxu0 %vm236_vm0, %v1736_v23 }
  0x8d   :  { %1151 = vmatmul.mubr.msk.f32.gmra.mrb[52].mxu1 %vm236_vm0, %v1736_v23  ;;  %728 = vmatprep.mubr.f32.mxu0 %v1270_v3 }
  0x8e   :  { %1153 = vmatprep.mubr.msk.f32.mxu1 %vm1272_vm1, %v1270_v3 }
  0x90   :  { %1039 = vmatmul.mubr.msk.f32.gmra.mrb[54].mxu0 %vm236_vm0, %v1747_v24 }
  0x91   :  { %1154 = vmatmul.mubr.msk.f32.gmra.mrb[54].mxu1 %vm236_vm0, %v1747_v24  ;;  %734 = vmatprep.mubr.f32.mxu0 %v1270_v3 }
  0x92   :  { %1156 = vmatprep.mubr.msk.f32.mxu1 %vm1272_vm1, %v1270_v3 }
  0x94   :  { %1040 = vmatmul.mubr.msk.f32.gmra.mrb[56].mxu0 %vm236_vm0, %v1758_v26 }
  0x95   :  { %1157 = vmatmul.mubr.msk.f32.gmra.mrb[56].mxu1 %vm236_vm0, %v1758_v26  ;;  %740 = vmatprep.mubr.f32.mxu0 %v1270_v3 }
  0x96   :  { %1159 = vmatprep.mubr.msk.f32.mxu1 %vm1272_vm1, %v1270_v3 }
  0x98   :  { %1041 = vmatmul.mubr.msk.f32.gmra.mrb[58].mxu0 %vm236_vm0, %v1769_v27 }
  0x99   :  { %1160 = vmatmul.mubr.msk.f32.gmra.mrb[58].mxu1 %vm236_vm0, %v1769_v27 }
  0xf7   :  { %v348_v39 = vpop.f32.mrb[0].mxu0 }
  0xf8   :  { %887 = vst [vmem:[%s2213_s2] sm:$0xff] %v348_v39  ;;  %v350_v55 = vpop.f32.mrb[1].mxu0  ;;  %v503_v9 = vpop.f32.mrb[0].mxu1 }
  0xf9   :  { %888 = vst [vmem:[%s2213_s2 + $0x8] sm:$0xff] %v350_v55  ;;  %889 = vst [vmem:[%s2213_s2 + $0x10] sm:$0xff] %v503_v9  ;;  %v505_v3 = vpop.f32.mrb[1].mxu1 }
  0xfa   :  { %890 = vst [vmem:[%s2213_s2 + $0x18] sm:$0xff] %v505_v3 }
  0xfb   :  { %v354_v25 = vpop.f32.mrb[2].mxu0 }
  0xfc   :  { %895 = vst [vmem:[%s2213_s2 + $0x38] sm:$0xff] %v354_v25  ;;  %v356_v28 = vpop.f32.mrb[3].mxu0  ;;  %v509_v29 = vpop.f32.mrb[2].mxu1 }
  0xfd   :  { %896 = vst [vmem:[%s2213_s2 + $0x40] sm:$0xff] %v356_v28  ;;  %897 = vst [vmem:[%s2213_s2 + $0x48] sm:$0xff] %v509_v29  ;;  %v511_v30 = vpop.f32.mrb[3].mxu1 }
  0xfe   :  { %898 = vst [vmem:[%s2213_s2 + $0x50] sm:$0xff] %v511_v30 }
  0xff   :  { %v360_v31 = vpop.f32.mrb[4].mxu0 }
 0x100   :  { %902 = vst [vmem:[%s2213_s2 + $0x70] sm:$0xff] %v360_v31  ;;  %v362_v32 = vpop.f32.mrb[5].mxu0  ;;  %v515_v33 = vpop.f32.mrb[4].mxu1 }
 0x101   :  { %903 = vst [vmem:[%s2213_s2 + $0x78] sm:$0xff] %v362_v32  ;;  %904 = vst [vmem:[%s2213_s2 + $0x80] sm:$0xff] %v515_v33  ;;  %v517_v34 = vpop.f32.mrb[5].mxu1 }
 0x102   :  { %905 = vst [vmem:[%s2213_s2 + $0x88] sm:$0xff] %v517_v34 }
 0x103   :  { %v366_v35 = vpop.f32.mrb[6].mxu0 }
 0x104   :  { %909 = vst [vmem:[%s2213_s2 + $0xa8] sm:$0xff] %v366_v35  ;;  %v368_v36 = vpop.f32.mrb[7].mxu0  ;;  %v521_v37 = vpop.f32.mrb[6].mxu1 }
 0x105   :  { %910 = vst [vmem:[%s2213_s2 + $0xb0] sm:$0xff] %v368_v36  ;;  %911 = vst [vmem:[%s2213_s2 + $0xb8] sm:$0xff] %v521_v37  ;;  %v523_v38 = vpop.f32.mrb[7].mxu1 }
 0x106   :  { %912 = vst [vmem:[%s2213_s2 + $0xc0] sm:$0xff] %v523_v38 }
 0x107   :  { %v372_v40 = vpop.f32.mrb[8].mxu0 }
 0x108   :  { %916 = vst [vmem:[%s2213_s2 + $0xe0] sm:$0xff] %v372_v40  ;;  %v374_v41 = vpop.f32.mrb[9].mxu0  ;;  %v527_v42 = vpop.f32.mrb[8].mxu1 }
 0x109   :  { %917 = vst [vmem:[%s2213_s2 + $0xe8] sm:$0xff] %v374_v41  ;;  %918 = vst [vmem:[%s2213_s2 + $0xf0] sm:$0xff] %v527_v42  ;;  %v529_v43 = vpop.f32.mrb[9].mxu1 }
 0x10a   :  { %919 = vst [vmem:[%s2213_s2 + $0xf8] sm:$0xff] %v529_v43 }
 0x10b   :  { %v378_v44 = vpop.f32.mrb[10].mxu0 }
 0x10c   :  { %923 = vst [vmem:[%s2213_s2 + $0x118] sm:$0xff] %v378_v44  ;;  %v380_v45 = vpop.f32.mrb[11].mxu0  ;;  %v533_v46 = vpop.f32.mrb[10].mxu1 }
 0x10d   :  { %924 = vst [vmem:[%s2213_s2 + $0x120] sm:$0xff] %v380_v45  ;;  %925 = vst [vmem:[%s2213_s2 + $0x128] sm:$0xff] %v533_v46  ;;  %v535_v47 = vpop.f32.mrb[11].mxu1 }
 0x10e   :  { %926 = vst [vmem:[%s2213_s2 + $0x130] sm:$0xff] %v535_v47 }
 0x10f   :  { %v384_v48 = vpop.f32.mrb[12].mxu0 }
 0x110   :  { %930 = vst [vmem:[%s2213_s2 + $0x150] sm:$0xff] %v384_v48  ;;  %v386_v49 = vpop.f32.mrb[13].mxu0  ;;  %v539_v50 = vpop.f32.mrb[12].mxu1 }
 0x111   :  { %931 = vst [vmem:[%s2213_s2 + $0x158] sm:$0xff] %v386_v49  ;;  %932 = vst [vmem:[%s2213_s2 + $0x160] sm:$0xff] %v539_v50  ;;  %v541_v51 = vpop.f32.mrb[13].mxu1 }
 0x112   :  { %933 = vst [vmem:[%s2213_s2 + $0x168] sm:$0xff] %v541_v51 }
 0x113   :  { %v390_v52 = vpop.f32.mrb[14].mxu0 }
 0x114   :  { %937 = vst [vmem:[%s2213_s2 + $0x188] sm:$0xff] %v390_v52  ;;  %v392_v53 = vpop.f32.mrb[15].mxu0  ;;  %v545_v54 = vpop.f32.mrb[14].mxu1 }
 0x115   :  { %938 = vst [vmem:[%s2213_s2 + $0x190] sm:$0xff] %v392_v53  ;;  %939 = vst [vmem:[%s2213_s2 + $0x198] sm:$0xff] %v545_v54  ;;  %v547_v56 = vpop.f32.mrb[15].mxu1 }
 0x116   :  { %940 = vst [vmem:[%s2213_s2 + $0x1a0] sm:$0xff] %v547_v56 }
 0x117   :  { %v396_v57 = vpop.f32.mrb[16].mxu0 }
 0x118   :  { %944 = vst [vmem:[%s2213_s2 + $0x1c0] sm:$0xff] %v396_v57  ;;  %v398_v59 = vpop.f32.mrb[17].mxu0  ;;  %v551_v60 = vpop.f32.mrb[16].mxu1 }
 0x119   :  { %945 = vst [vmem:[%s2213_s2 + $0x1c8] sm:$0xff] %v398_v59  ;;  %946 = vst [vmem:[%s2213_s2 + $0x1d0] sm:$0xff] %v551_v60  ;;  %v553_v61 = vpop.f32.mrb[17].mxu1 }
 0x11a   :  { %947 = vst [vmem:[%s2213_s2 + $0x1d8] sm:$0xff] %v553_v61 }
 0x11b   :  { %v402_v62 = vpop.f32.mrb[18].mxu0 }
 0x11c   :  { %951 = vst [vmem:[%s2213_s2 + $0x1f8] sm:$0xff] %v402_v62  ;;  %v404_v63 = vpop.f32.mrb[19].mxu0  ;;  %v557_v0 = vpop.f32.mrb[18].mxu1 }
 0x11d   :  { %952 = vst [vmem:[%s2213_s2 + $0x200] sm:$0xff] %v404_v63  ;;  %953 = vst [vmem:[%s2213_s2 + $0x208] sm:$0xff] %v557_v0  ;;  %v559_v1 = vpop.f32.mrb[19].mxu1 }
 0x11e   :  { %954 = vst [vmem:[%s2213_s2 + $0x210] sm:$0xff] %v559_v1 }
 0x11f   :  { %v408_v2 = vpop.f32.mrb[20].mxu0 }
 0x120   :  { %958 = vst [vmem:[%s2213_s2 + $0x230] sm:$0xff] %v408_v2  ;;  %v410_v4 = vpop.f32.mrb[21].mxu0  ;;  %v563_v5 = vpop.f32.mrb[20].mxu1 }
 0x121   :  { %959 = vst [vmem:[%s2213_s2 + $0x238] sm:$0xff] %v410_v4  ;;  %960 = vst [vmem:[%s2213_s2 + $0x240] sm:$0xff] %v563_v5  ;;  %v565_v6 = vpop.f32.mrb[21].mxu1 }
 0x122   :  { %961 = vst [vmem:[%s2213_s2 + $0x248] sm:$0xff] %v565_v6 }
 0x123   :  { %v414_v7 = vpop.f32.mrb[22].mxu0 }
 0x124   :  { %965 = vst [vmem:[%s2213_s2 + $0x268] sm:$0xff] %v414_v7  ;;  %v416_v8 = vpop.f32.mrb[23].mxu0  ;;  %v569_v10 = vpop.f32.mrb[22].mxu1 }
 0x125   :  { %966 = vst [vmem:[%s2213_s2 + $0x270] sm:$0xff] %v416_v8  ;;  %967 = vst [vmem:[%s2213_s2 + $0x278] sm:$0xff] %v569_v10  ;;  %v571_v11 = vpop.f32.mrb[23].mxu1 }
 0x126   :  { %968 = vst [vmem:[%s2213_s2 + $0x280] sm:$0xff] %v571_v11 }
 0x127   :  { %v420_v12 = vpop.f32.mrb[24].mxu0 }
 0x128   :  { %972 = vst [vmem:[%s2213_s2 + $0x2a0] sm:$0xff] %v420_v12  ;;  %v422_v13 = vpop.f32.mrb[25].mxu0  ;;  %v575_v14 = vpop.f32.mrb[24].mxu1 }
 0x129   :  { %973 = vst [vmem:[%s2213_s2 + $0x2a8] sm:$0xff] %v422_v13  ;;  %974 = vst [vmem:[%s2213_s2 + $0x2b0] sm:$0xff] %v575_v14  ;;  %v577_v15 = vpop.f32.mrb[25].mxu1 }
 0x12a   :  { %975 = vst [vmem:[%s2213_s2 + $0x2b8] sm:$0xff] %v577_v15 }
 0x12b   :  { %v426_v16 = vpop.f32.mrb[26].mxu0 }
 0x12c   :  { %979 = vst [vmem:[%s2213_s2 + $0x2d8] sm:$0xff] %v426_v16  ;;  %v428_v17 = vpop.f32.mrb[27].mxu0  ;;  %v581_v18 = vpop.f32.mrb[26].mxu1 }
 0x12d   :  { %980 = vst [vmem:[%s2213_s2 + $0x2e0] sm:$0xff] %v428_v17  ;;  %981 = vst [vmem:[%s2213_s2 + $0x2e8] sm:$0xff] %v581_v18  ;;  %v583_v19 = vpop.f32.mrb[27].mxu1 }
 0x12e   :  { %982 = vst [vmem:[%s2213_s2 + $0x2f0] sm:$0xff] %v583_v19 }
 0x12f   :  { %v432_v20 = vpop.f32.mrb[28].mxu0 }
 0x130   :  { %986 = vst [vmem:[%s2213_s2 + $0x310] sm:$0xff] %v432_v20  ;;  %v434_v21 = vpop.f32.mrb[29].mxu0  ;;  %v587_v58 = vpop.f32.mrb[28].mxu1 }
 0x131   :  { %987 = vst [vmem:[%s2213_s2 + $0x318] sm:$0xff] %v434_v21  ;;  %988 = vst [vmem:[%s2213_s2 + $0x320] sm:$0xff] %v587_v58  ;;  %v589_v22 = vpop.f32.mrb[29].mxu1 }
 0x132   :  { %989 = vst [vmem:[%s2213_s2 + $0x328] sm:$0xff] %v589_v22 }
 0x133   :  { %v658_v23 = vpop.f32.mrb[30].mxu0 }
 0x134   :  { %891 = vst [vmem:[%s2213_s2 + $0x20] sm:$0xff] %v658_v23  ;;  %v660_v24 = vpop.f32.mrb[31].mxu0  ;;  %v813_v26 = vpop.f32.mrb[30].mxu1 }
 0x135   :  { %892 = vst [vmem:[%s2213_s2 + $0x28] sm:$0xff] %v660_v24  ;;  %894 = vst.msk [vmem:[%s2213_s2 + $0x30] sm:$0xff] %vm893_vm2, %v813_v26  ;;  %v1119_v27 = vpop.f32.mrb[31].mxu1 }
 0x137   :  { %v664_v39 = vpop.f32.mrb[32].mxu0 }
 0x138   :  { %899 = vst [vmem:[%s2213_s2 + $0x58] sm:$0xff] %v664_v39  ;;  %v666_v55 = vpop.f32.mrb[33].mxu0  ;;  %v818_v9 = vpop.f32.mrb[32].mxu1 }
 0x139   :  { %900 = vst [vmem:[%s2213_s2 + $0x60] sm:$0xff] %v666_v55  ;;  %901 = vst.msk [vmem:[%s2213_s2 + $0x68] sm:$0xff] %vm893_vm2, %v818_v9  ;;  %v1122_v3 = vpop.f32.mrb[33].mxu1 }
 0x13b   :  { %v670_v25 = vpop.f32.mrb[34].mxu0 }
 0x13c   :  { %906 = vst [vmem:[%s2213_s2 + $0x90] sm:$0xff] %v670_v25  ;;  %v672_v28 = vpop.f32.mrb[35].mxu0  ;;  %v823_v29 = vpop.f32.mrb[34].mxu1 }
 0x13d   :  { %907 = vst [vmem:[%s2213_s2 + $0x98] sm:$0xff] %v672_v28  ;;  %908 = vst.msk [vmem:[%s2213_s2 + $0xa0] sm:$0xff] %vm893_vm2, %v823_v29  ;;  %v1125_v30 = vpop.f32.mrb[35].mxu1 }
 0x13f   :  { %v676_v31 = vpop.f32.mrb[36].mxu0 }
 0x140   :  { %913 = vst [vmem:[%s2213_s2 + $0xc8] sm:$0xff] %v676_v31  ;;  %v678_v32 = vpop.f32.mrb[37].mxu0  ;;  %v828_v33 = vpop.f32.mrb[36].mxu1 }
 0x141   :  { %914 = vst [vmem:[%s2213_s2 + $0xd0] sm:$0xff] %v678_v32  ;;  %915 = vst.msk [vmem:[%s2213_s2 + $0xd8] sm:$0xff] %vm893_vm2, %v828_v33  ;;  %v1128_v34 = vpop.f32.mrb[37].mxu1 }
 0x143   :  { %v682_v35 = vpop.f32.mrb[38].mxu0 }
 0x144   :  { %920 = vst [vmem:[%s2213_s2 + $0x100] sm:$0xff] %v682_v35  ;;  %v684_v36 = vpop.f32.mrb[39].mxu0  ;;  %v833_v37 = vpop.f32.mrb[38].mxu1 }
 0x145   :  { %921 = vst [vmem:[%s2213_s2 + $0x108] sm:$0xff] %v684_v36  ;;  %922 = vst.msk [vmem:[%s2213_s2 + $0x110] sm:$0xff] %vm893_vm2, %v833_v37  ;;  %v1131_v38 = vpop.f32.mrb[39].mxu1 }
 0x147   :  { %v688_v40 = vpop.f32.mrb[40].mxu0 }
 0x148   :  { %927 = vst [vmem:[%s2213_s2 + $0x138] sm:$0xff] %v688_v40  ;;  %v690_v41 = vpop.f32.mrb[41].mxu0  ;;  %v838_v42 = vpop.f32.mrb[40].mxu1 }
 0x149   :  { %928 = vst [vmem:[%s2213_s2 + $0x140] sm:$0xff] %v690_v41  ;;  %929 = vst.msk [vmem:[%s2213_s2 + $0x148] sm:$0xff] %vm893_vm2, %v838_v42  ;;  %v1134_v43 = vpop.f32.mrb[41].mxu1 }
 0x14b   :  { %v694_v44 = vpop.f32.mrb[42].mxu0 }
 0x14c   :  { %934 = vst [vmem:[%s2213_s2 + $0x170] sm:$0xff] %v694_v44  ;;  %v696_v45 = vpop.f32.mrb[43].mxu0  ;;  %v843_v46 = vpop.f32.mrb[42].mxu1 }
 0x14d   :  { %935 = vst [vmem:[%s2213_s2 + $0x178] sm:$0xff] %v696_v45  ;;  %936 = vst.msk [vmem:[%s2213_s2 + $0x180] sm:$0xff] %vm893_vm2, %v843_v46  ;;  %v1137_v47 = vpop.f32.mrb[43].mxu1 }
 0x14f   :  { %v700_v48 = vpop.f32.mrb[44].mxu0 }
 0x150   :  { %941 = vst [vmem:[%s2213_s2 + $0x1a8] sm:$0xff] %v700_v48  ;;  %v702_v49 = vpop.f32.mrb[45].mxu0  ;;  %v848_v50 = vpop.f32.mrb[44].mxu1 }
 0x151   :  { %942 = vst [vmem:[%s2213_s2 + $0x1b0] sm:$0xff] %v702_v49  ;;  %943 = vst.msk [vmem:[%s2213_s2 + $0x1b8] sm:$0xff] %vm893_vm2, %v848_v50  ;;  %v1140_v51 = vpop.f32.mrb[45].mxu1 }
 0x153   :  { %v706_v52 = vpop.f32.mrb[46].mxu0 }
 0x154   :  { %948 = vst [vmem:[%s2213_s2 + $0x1e0] sm:$0xff] %v706_v52  ;;  %v708_v53 = vpop.f32.mrb[47].mxu0  ;;  %v853_v54 = vpop.f32.mrb[46].mxu1 }
 0x155   :  { %949 = vst [vmem:[%s2213_s2 + $0x1e8] sm:$0xff] %v708_v53  ;;  %950 = vst.msk [vmem:[%s2213_s2 + $0x1f0] sm:$0xff] %vm893_vm2, %v853_v54  ;;  %v1143_v56 = vpop.f32.mrb[47].mxu1 }
 0x157   :  { %v712_v57 = vpop.f32.mrb[48].mxu0 }
 0x158   :  { %955 = vst [vmem:[%s2213_s2 + $0x218] sm:$0xff] %v712_v57  ;;  %v714_v59 = vpop.f32.mrb[49].mxu0  ;;  %v858_v60 = vpop.f32.mrb[48].mxu1 }
 0x159   :  { %956 = vst [vmem:[%s2213_s2 + $0x220] sm:$0xff] %v714_v59  ;;  %957 = vst.msk [vmem:[%s2213_s2 + $0x228] sm:$0xff] %vm893_vm2, %v858_v60  ;;  %v1146_v61 = vpop.f32.mrb[49].mxu1 }
 0x15b   :  { %v718_v62 = vpop.f32.mrb[50].mxu0 }
 0x15c   :  { %962 = vst [vmem:[%s2213_s2 + $0x250] sm:$0xff] %v718_v62  ;;  %v720_v63 = vpop.f32.mrb[51].mxu0  ;;  %v863_v0 = vpop.f32.mrb[50].mxu1 }
 0x15d   :  { %963 = vst [vmem:[%s2213_s2 + $0x258] sm:$0xff] %v720_v63  ;;  %964 = vst.msk [vmem:[%s2213_s2 + $0x260] sm:$0xff] %vm893_vm2, %v863_v0  ;;  %v1149_v1 = vpop.f32.mrb[51].mxu1 }
 0x15f   :  { %v724_v2 = vpop.f32.mrb[52].mxu0 }
 0x160   :  { %969 = vst [vmem:[%s2213_s2 + $0x288] sm:$0xff] %v724_v2  ;;  %v726_v4 = vpop.f32.mrb[53].mxu0  ;;  %v868_v5 = vpop.f32.mrb[52].mxu1 }
 0x161   :  { %970 = vst [vmem:[%s2213_s2 + $0x290] sm:$0xff] %v726_v4  ;;  %971 = vst.msk [vmem:[%s2213_s2 + $0x298] sm:$0xff] %vm893_vm2, %v868_v5  ;;  %v1152_v6 = vpop.f32.mrb[53].mxu1 }
 0x163   :  { %v730_v7 = vpop.f32.mrb[54].mxu0 }
 0x164   :  { %976 = vst [vmem:[%s2213_s2 + $0x2c0] sm:$0xff] %v730_v7  ;;  %v732_v8 = vpop.f32.mrb[55].mxu0  ;;  %v873_v10 = vpop.f32.mrb[54].mxu1 }
 0x165   :  { %977 = vst [vmem:[%s2213_s2 + $0x2c8] sm:$0xff] %v732_v8  ;;  %978 = vst.msk [vmem:[%s2213_s2 + $0x2d0] sm:$0xff] %vm893_vm2, %v873_v10  ;;  %v1155_v11 = vpop.f32.mrb[55].mxu1 }
 0x167   :  { %v736_v12 = vpop.f32.mrb[56].mxu0 }
 0x168   :  { %983 = vst [vmem:[%s2213_s2 + $0x2f8] sm:$0xff] %v736_v12  ;;  %v738_v13 = vpop.f32.mrb[57].mxu0  ;;  %v878_v14 = vpop.f32.mrb[56].mxu1 }
 0x169   :  { %984 = vst [vmem:[%s2213_s2 + $0x300] sm:$0xff] %v738_v13  ;;  %985 = vst.msk [vmem:[%s2213_s2 + $0x308] sm:$0xff] %vm893_vm2, %v878_v14  ;;  %v1158_v15 = vpop.f32.mrb[57].mxu1 }
 0x16b   :  { %v742_v16 = vpop.f32.mrb[58].mxu0 }
 0x16c   :  { %990 = vst [vmem:[%s2213_s2 + $0x330] sm:$0xff] %v742_v16  ;;  %v744_v17 = vpop.f32.mrb[59].mxu0  ;;  %v883_v18 = vpop.f32.mrb[58].mxu1 }
 0x16d   :  { %991 = vst [vmem:[%s2213_s2 + $0x338] sm:$0xff] %v744_v17  ;;  %992 = vst.msk [vmem:[%s2213_s2 + $0x340] sm:$0xff] %vm893_vm2, %v883_v18  ;;  %v1161_v19 = vpop.f32.mrb[59].mxu1 }

</bundles_post_ra>
